<compile_context>
chip_gen: v5e
topology: v5e:2x2
jax: 0.10.0
libtpu: 0.0.40
codegen_flags: <defaults>
</compile_context>

<pallas_src>
import jax
import jax.numpy as jnp
from jax.experimental import pallas as pl
from jax.experimental.pallas import tpu as pltpu

K_PAD = 896          # 784 padded up to 7 * 128
OUT_PAD = 128        # 10 logits padded up to one full lane width


def _round_up(x, m):
    return (x + m - 1) // m * m


def mlp_kernel(x_ref,
               w1_ref, b1_ref,
               w2_ref, b2_ref,
               w3_ref, b3_ref,
               w4_ref, b4_ref,
               w5_ref, b5_ref,
               o_ref):
    # x_ref: (TB, 896) bf16; wN_ref: (in, out) bf16; bN_ref: (1, out) f32
    # All dots accumulate in f32 on the MXU; bias add + ReLU stay f32 on the VPU.
    h = jnp.dot(x_ref[...], w1_ref[...], preferred_element_type=jnp.float32)
    h = jnp.maximum(h + b1_ref[...], 0.0)

    h = jnp.dot(h.astype(jnp.bfloat16), w2_ref[...],
                preferred_element_type=jnp.float32)
    h = jnp.maximum(h + b2_ref[...], 0.0)

    h = jnp.dot(h.astype(jnp.bfloat16), w3_ref[...],
                preferred_element_type=jnp.float32)
    h = jnp.maximum(h + b3_ref[...], 0.0)

    h = jnp.dot(h.astype(jnp.bfloat16), w4_ref[...],
                preferred_element_type=jnp.float32)
    h = jnp.maximum(h + b4_ref[...], 0.0)

    out = jnp.dot(h.astype(jnp.bfloat16), w5_ref[...],
                  preferred_element_type=jnp.float32)
    o_ref[...] = out + b5_ref[...]          # (TB, 128) lane-dense f32 store


def net_forward(x, params):
    """x: (B, 1, 28, 28) or (B, 784) float32. Returns (B, 10) float32."""
    x2d = x.reshape(-1, 28 * 28).astype(jnp.float32)
    B = x2d.shape[0]

    # Row tile: 256 rows for large batches (fills a 256x256 MXU), otherwise the
    # whole (sublane-aligned) batch in a single tile.
    TB = 256 if B >= 256 else _round_up(B, 8)
    Bp = _round_up(B, TB)

    (w1, b1), (w2, b2), (w3, b3), (w4, b4), (w5, b5) = params

    # Pad x to (Bp, 896) and cast to bf16; pad w1 rows to 896 (zero rows).
    xp = jnp.pad(x2d.astype(jnp.bfloat16), ((0, Bp - B), (0, K_PAD - 784)))
    w1p = jnp.pad(w1.astype(jnp.bfloat16), ((0, K_PAD - 784), (0, 0)))
    # Pad the output layer to 128 lanes (zero columns / zero bias tail).
    w5p = jnp.pad(w5.astype(jnp.bfloat16), ((0, 0), (0, OUT_PAD - 10)))
    b5p = jnp.pad(b5, (0, OUT_PAD - 10)).reshape(1, -1)

    args = (xp,
            w1p, b1.reshape(1, -1),
            w2.astype(jnp.bfloat16), b2.reshape(1, -1),
            w3.astype(jnp.bfloat16), b3.reshape(1, -1),
            w4.astype(jnp.bfloat16), b4.reshape(1, -1),
            w5p, b5p)

    def const_spec(shape):
        # Weights / biases: same block for every grid step -> VMEM-resident.
        return pl.BlockSpec(shape, lambda i: (0, 0))

    in_specs = [
        pl.BlockSpec((TB, K_PAD), lambda i: (i, 0)),       # x tile
        const_spec((K_PAD, 128)), const_spec((1, 128)),    # layer 1
        const_spec((128, 256)),   const_spec((1, 256)),    # layer 2
        const_spec((256, 256)),   const_spec((1, 256)),    # layer 3
        const_spec((256, 128)),   const_spec((1, 128)),    # layer 4
        const_spec((128, OUT_PAD)), const_spec((1, OUT_PAD)),  # layer 5
    ]
    out_specs = pl.BlockSpec((TB, OUT_PAD), lambda i: (i, 0))

    out_padded = pl.pallas_call(
        mlp_kernel,
        out_shape=jax.ShapeDtypeStruct((Bp, OUT_PAD), jnp.float32),
        grid=(Bp // TB,),
        in_specs=in_specs,
        out_specs=out_specs,
        compiler_params=pltpu.CompilerParams(
            dimension_semantics=("parallel",)),   # megacore sharding on v7x
    )(*args)

    return out_padded[:B, :10]


def init_params(key):
    """Deterministic init matching the nn.Linear shapes in Net.__init__.

    PyTorch stores Linear weights as (out, in); here we store them transposed
    as (in, out) so the kernel does x @ W. Uniform(-1/sqrt(in), 1/sqrt(in)),
    same scale as torch's default Linear init. Parameters are kept in f32; the
    wrapper casts weights to bf16 for the MXU.
    """
    dims = [(28 * 28, 128), (128, 256), (256, 256), (256, 128), (128, 10)]
    params = []
    for (fan_in, fan_out) in dims:
        key, kw, kb = jax.random.split(key, 3)
        bound = 1.0 / (fan_in ** 0.5)
        w = jax.random.uniform(kw, (fan_in, fan_out), jnp.float32, -bound, bound)
        b = jax.random.uniform(kb, (fan_out,), jnp.float32, -bound, bound)
        params.append((w, b))
    return params


if __name__ == "__main__":
    key = jax.random.PRNGKey(0)
    key, kx = jax.random.split(key)

    params = init_params(key)

    # Small MNIST-like batch: NCHW (B, 1, 28, 28)
    x = jax.random.normal(kx, (8, 1, 28, 28), dtype=jnp.float32)

    out = net_forward(x, params)
    out = jax.block_until_ready(out)

    # Sanity check against a plain-JAX f32 reference of the same forward pass.
    # (Kernel uses bf16 matmul inputs with f32 accumulation -> loose tolerance.)
    h = x.reshape(-1, 28 * 28)
    for i, (w, b) in enumerate(params):
        h = h @ w + b
        if i < len(params) - 1:
            h = jnp.maximum(h, 0.0)
    assert out.shape == (8, 10)
    assert jnp.allclose(out, h, atol=5e-2, rtol=5e-2), (
        float(jnp.max(jnp.abs(out - h))))

    print("KERNEL_OK")
</pallas_src>

<mosaic_0001>
module attributes {stable_mosaic.version = 11 : i64} {
  func.func @mlp_kernel(%arg0: i32, %arg1: memref<8x896xbf16, #tpu.memory_space<vmem>>, %arg2: memref<896x128xbf16, #tpu.memory_space<vmem>>, %arg3: memref<1x128xf32, #tpu.memory_space<vmem>>, %arg4: memref<128x256xbf16, #tpu.memory_space<vmem>>, %arg5: memref<1x256xf32, #tpu.memory_space<vmem>>, %arg6: memref<256x256xbf16, #tpu.memory_space<vmem>>, %arg7: memref<1x256xf32, #tpu.memory_space<vmem>>, %arg8: memref<256x128xbf16, #tpu.memory_space<vmem>>, %arg9: memref<1x128xf32, #tpu.memory_space<vmem>>, %arg10: memref<128x128xbf16, #tpu.memory_space<vmem>>, %arg11: memref<1x128xf32, #tpu.memory_space<vmem>>, %arg12: memref<8x128xf32, #tpu.memory_space<vmem>>) attributes {dimension_semantics = [#tpu.dimension_semantics<parallel>], iteration_bounds = array<i64: 1>, scalar_prefetch = 0 : i64, scratch_operands = 0 : i64, tpu.core_type = #tpu.core_type<tc>, window_params = [{transform_indices = @transform_0, window_bounds = array<i64: 8, 896>}, {pipeline_mode = #tpu.pipeline_mode<synchronous>, transform_indices = @transform_1, window_bounds = array<i64: 896, 128>}, {pipeline_mode = #tpu.pipeline_mode<synchronous>, transform_indices = @transform_2, window_bounds = array<i64: 1, 128>}, {pipeline_mode = #tpu.pipeline_mode<synchronous>, transform_indices = @transform_3, window_bounds = array<i64: 128, 256>}, {pipeline_mode = #tpu.pipeline_mode<synchronous>, transform_indices = @transform_4, window_bounds = array<i64: 1, 256>}, {pipeline_mode = #tpu.pipeline_mode<synchronous>, transform_indices = @transform_5, window_bounds = array<i64: 256, 256>}, {pipeline_mode = #tpu.pipeline_mode<synchronous>, transform_indices = @transform_6, window_bounds = array<i64: 1, 256>}, {pipeline_mode = #tpu.pipeline_mode<synchronous>, transform_indices = @transform_7, window_bounds = array<i64: 256, 128>}, {pipeline_mode = #tpu.pipeline_mode<synchronous>, transform_indices = @transform_8, window_bounds = array<i64: 1, 128>}, {pipeline_mode = #tpu.pipeline_mode<synchronous>, transform_indices = @transform_9, window_bounds = array<i64: 128, 128>}, {pipeline_mode = #tpu.pipeline_mode<synchronous>, transform_indices = @transform_10, window_bounds = array<i64: 1, 128>}, {transform_indices = @transform_11, window_bounds = array<i64: 8, 128>}]} {
    %c0 = arith.constant 0 : index
    %c0_0 = arith.constant 0 : index
    %0 = vector.load %arg1[%c0, %c0_0] : memref<8x896xbf16, #tpu.memory_space<vmem>>, vector<8x896xbf16>
    %c0_1 = arith.constant 0 : index
    %c0_2 = arith.constant 0 : index
    %1 = vector.load %arg2[%c0_1, %c0_2] : memref<896x128xbf16, #tpu.memory_space<vmem>>, vector<896x128xbf16>
    %cst = arith.constant dense<0.000000e+00> : vector<8x128xf32>
    %2 = tpu.matmul %0, %1, %cst {dimension_numbers = #tpu.dot_dimension_numbers<[1], [0], [0], [1], [0, 0, 1, 1], [], []>} : vector<8x896xbf16>, vector<896x128xbf16>, vector<8x128xf32> -> vector<8x128xf32>
    %c0_3 = arith.constant 0 : index
    %c0_4 = arith.constant 0 : index
    %3 = vector.load %arg3[%c0_3, %c0_4] : memref<1x128xf32, #tpu.memory_space<vmem>>, vector<1x128xf32>
    %4 = vector.broadcast %3 : vector<1x128xf32> to vector<8x128xf32>
    %5 = arith.addf %2, %4 : vector<8x128xf32>
    %cst_5 = arith.constant 0.000000e+00 : f32
    %6 = vector.broadcast %cst_5 : f32 to vector<8x128xf32>
    %7 = arith.maximumf %5, %6 : vector<8x128xf32>
    %8 = arith.truncf %7 : vector<8x128xf32> to vector<8x128xbf16>
    %c0_6 = arith.constant 0 : index
    %c0_7 = arith.constant 0 : index
    %9 = vector.load %arg4[%c0_6, %c0_7] : memref<128x256xbf16, #tpu.memory_space<vmem>>, vector<128x256xbf16>
    %cst_8 = arith.constant dense<0.000000e+00> : vector<8x256xf32>
    %10 = tpu.matmul %8, %9, %cst_8 {dimension_numbers = #tpu.dot_dimension_numbers<[1], [0], [0], [1], [0, 0, 1, 1], [], []>} : vector<8x128xbf16>, vector<128x256xbf16>, vector<8x256xf32> -> vector<8x256xf32>
    %c0_9 = arith.constant 0 : index
    %c0_10 = arith.constant 0 : index
    %11 = vector.load %arg5[%c0_9, %c0_10] : memref<1x256xf32, #tpu.memory_space<vmem>>, vector<1x256xf32>
    %12 = vector.broadcast %11 : vector<1x256xf32> to vector<8x256xf32>
    %13 = arith.addf %10, %12 : vector<8x256xf32>
    %cst_11 = arith.constant 0.000000e+00 : f32
    %14 = vector.broadcast %cst_11 : f32 to vector<8x256xf32>
    %15 = arith.maximumf %13, %14 : vector<8x256xf32>
    %16 = arith.truncf %15 : vector<8x256xf32> to vector<8x256xbf16>
    %c0_12 = arith.constant 0 : index
    %c0_13 = arith.constant 0 : index
    %17 = vector.load %arg6[%c0_12, %c0_13] : memref<256x256xbf16, #tpu.memory_space<vmem>>, vector<256x256xbf16>
    %cst_14 = arith.constant dense<0.000000e+00> : vector<8x256xf32>
    %18 = tpu.matmul %16, %17, %cst_14 {dimension_numbers = #tpu.dot_dimension_numbers<[1], [0], [0], [1], [0, 0, 1, 1], [], []>} : vector<8x256xbf16>, vector<256x256xbf16>, vector<8x256xf32> -> vector<8x256xf32>
    %c0_15 = arith.constant 0 : index
    %c0_16 = arith.constant 0 : index
    %19 = vector.load %arg7[%c0_15, %c0_16] : memref<1x256xf32, #tpu.memory_space<vmem>>, vector<1x256xf32>
    %20 = vector.broadcast %19 : vector<1x256xf32> to vector<8x256xf32>
    %21 = arith.addf %18, %20 : vector<8x256xf32>
    %cst_17 = arith.constant 0.000000e+00 : f32
    %22 = vector.broadcast %cst_17 : f32 to vector<8x256xf32>
    %23 = arith.maximumf %21, %22 : vector<8x256xf32>
    %24 = arith.truncf %23 : vector<8x256xf32> to vector<8x256xbf16>
    %c0_18 = arith.constant 0 : index
    %c0_19 = arith.constant 0 : index
    %25 = vector.load %arg8[%c0_18, %c0_19] : memref<256x128xbf16, #tpu.memory_space<vmem>>, vector<256x128xbf16>
    %cst_20 = arith.constant dense<0.000000e+00> : vector<8x128xf32>
    %26 = tpu.matmul %24, %25, %cst_20 {dimension_numbers = #tpu.dot_dimension_numbers<[1], [0], [0], [1], [0, 0, 1, 1], [], []>} : vector<8x256xbf16>, vector<256x128xbf16>, vector<8x128xf32> -> vector<8x128xf32>
    %c0_21 = arith.constant 0 : index
    %c0_22 = arith.constant 0 : index
    %27 = vector.load %arg9[%c0_21, %c0_22] : memref<1x128xf32, #tpu.memory_space<vmem>>, vector<1x128xf32>
    %28 = vector.broadcast %27 : vector<1x128xf32> to vector<8x128xf32>
    %29 = arith.addf %26, %28 : vector<8x128xf32>
    %cst_23 = arith.constant 0.000000e+00 : f32
    %30 = vector.broadcast %cst_23 : f32 to vector<8x128xf32>
    %31 = arith.maximumf %29, %30 : vector<8x128xf32>
    %32 = arith.truncf %31 : vector<8x128xf32> to vector<8x128xbf16>
    %c0_24 = arith.constant 0 : index
    %c0_25 = arith.constant 0 : index
    %33 = vector.load %arg10[%c0_24, %c0_25] : memref<128x128xbf16, #tpu.memory_space<vmem>>, vector<128x128xbf16>
    %cst_26 = arith.constant dense<0.000000e+00> : vector<8x128xf32>
    %34 = tpu.matmul %32, %33, %cst_26 {dimension_numbers = #tpu.dot_dimension_numbers<[1], [0], [0], [1], [0, 0, 1, 1], [], []>} : vector<8x128xbf16>, vector<128x128xbf16>, vector<8x128xf32> -> vector<8x128xf32>
    %c0_27 = arith.constant 0 : index
    %c0_28 = arith.constant 0 : index
    %35 = vector.load %arg11[%c0_27, %c0_28] : memref<1x128xf32, #tpu.memory_space<vmem>>, vector<1x128xf32>
    %36 = vector.broadcast %35 : vector<1x128xf32> to vector<8x128xf32>
    %37 = arith.addf %34, %36 : vector<8x128xf32>
    %c0_29 = arith.constant 0 : index
    %c0_30 = arith.constant 0 : index
    %38 = vector.load %arg12[%c0_29, %c0_30] : memref<8x128xf32, #tpu.memory_space<vmem>>, vector<8x128xf32>
    tpu.vector_store %arg12[%c0_29, %c0_30], %37 {strides = array<i32>} : memref<8x128xf32, #tpu.memory_space<vmem>>, vector<8x128xf32>,
    return
  }
  func.func @transform_0(%arg0: i32) -> (i32, i32) {
    %c0_i32 = arith.constant 0 : i32
    %c0_i32_0 = arith.constant 0 : i32
    return %arg0, %c0_i32 : i32, i32
  }
  func.func @transform_1(%arg0: i32) -> (i32, i32) {
    %c0_i32 = arith.constant 0 : i32
    %c0_i32_0 = arith.constant 0 : i32
    %c0_i32_1 = arith.constant 0 : i32
    return %c0_i32, %c0_i32_0 : i32, i32
  }
  func.func @transform_2(%arg0: i32) -> (i32, i32) {
    %c0_i32 = arith.constant 0 : i32
    %c0_i32_0 = arith.constant 0 : i32
    %c0_i32_1 = arith.constant 0 : i32
    return %c0_i32, %c0_i32_0 : i32, i32
  }
  func.func @transform_3(%arg0: i32) -> (i32, i32) {
    %c0_i32 = arith.constant 0 : i32
    %c0_i32_0 = arith.constant 0 : i32
    %c0_i32_1 = arith.constant 0 : i32
    return %c0_i32, %c0_i32_0 : i32, i32
  }
  func.func @transform_4(%arg0: i32) -> (i32, i32) {
    %c0_i32 = arith.constant 0 : i32
    %c0_i32_0 = arith.constant 0 : i32
    %c0_i32_1 = arith.constant 0 : i32
    return %c0_i32, %c0_i32_0 : i32, i32
  }
  func.func @transform_5(%arg0: i32) -> (i32, i32) {
    %c0_i32 = arith.constant 0 : i32
    %c0_i32_0 = arith.constant 0 : i32
    %c0_i32_1 = arith.constant 0 : i32
    return %c0_i32, %c0_i32_0 : i32, i32
  }
  func.func @transform_6(%arg0: i32) -> (i32, i32) {
    %c0_i32 = arith.constant 0 : i32
    %c0_i32_0 = arith.constant 0 : i32
    %c0_i32_1 = arith.constant 0 : i32
    return %c0_i32, %c0_i32_0 : i32, i32
  }
  func.func @transform_7(%arg0: i32) -> (i32, i32) {
    %c0_i32 = arith.constant 0 : i32
    %c0_i32_0 = arith.constant 0 : i32
    %c0_i32_1 = arith.constant 0 : i32
    return %c0_i32, %c0_i32_0 : i32, i32
  }
  func.func @transform_8(%arg0: i32) -> (i32, i32) {
    %c0_i32 = arith.constant 0 : i32
    %c0_i32_0 = arith.constant 0 : i32
    %c0_i32_1 = arith.constant 0 : i32
    return %c0_i32, %c0_i32_0 : i32, i32
  }
  func.func @transform_9(%arg0: i32) -> (i32, i32) {
    %c0_i32 = arith.constant 0 : i32
    %c0_i32_0 = arith.constant 0 : i32
    %c0_i32_1 = arith.constant 0 : i32
    return %c0_i32, %c0_i32_0 : i32, i32
  }
  func.func @transform_10(%arg0: i32) -> (i32, i32) {
    %c0_i32 = arith.constant 0 : i32
    %c0_i32_0 = arith.constant 0 : i32
    %c0_i32_1 = arith.constant 0 : i32
    return %c0_i32, %c0_i32_0 : i32, i32
  }
  func.func @transform_11(%arg0: i32) -> (i32, i32) {
    %c0_i32 = arith.constant 0 : i32
    %c0_i32_0 = arith.constant 0 : i32
    return %arg0, %c0_i32 : i32, i32
  }
}

</mosaic_0001>

<bundles_post_ra>
// kernel: tpu_custom_call.1
= control target key start
LH: loop header
LB: loop body
LE: loop exit
PB: predicated region body
PF: predicated region fallthrough
CT: control target
= control target key end

     0   :  { %16 = vsyncpa [#allocation3], 0  ;;  %s2355_s0 = inlined_call_operand.hbm [shape: bf16[8,896], index: 0, kind: input, shape index: {}]   ;;  %s2356_s1 = inlined_call_operand.hbm [shape: bf16[896,128], index: 1, kind: input, shape index: {}]   ;;  %s2357_s2 = inlined_call_operand.hbm [shape: f32[1,128], index: 2, kind: input, shape index: {}]   ;;  %s2358_s3 = inlined_call_operand.hbm [shape: bf16[128,256], index: 3, kind: input, shape index: {}]   ;;  %s2359_s4 = inlined_call_operand.vmem [shape: f32[1,256], index: 4, kind: input, shape index: {}]   ;;  %s2360_s5 = inlined_call_operand.hbm [shape: bf16[256,256], index: 5, kind: input, shape index: {}]   ;;  %s2361_s6 = inlined_call_operand.vmem [shape: f32[1,256], index: 6, kind: input, shape index: {}]   ;;  %s2362_s7 = inlined_call_operand.hbm [shape: bf16[256,128], index: 7, kind: input, shape index: {}]   ;;  %s2363_s8 = inlined_call_operand.vmem [shape: f32[1,128], index: 8, kind: input, shape index: {}]   ;;  %s2364_s9 = inlined_call_operand.hbm [shape: bf16[128,128], index: 9, kind: input, shape index: {}]   ;;  %s2365_s10 = inlined_call_operand.vmem [shape: f32[1,128], index: 10, kind: input, shape index: {}]   ;;  %s2366_s11 = inlined_call_operand.hbm [shape: f32[8,128], index: 11, kind: output, shape index: {}]  }
   0x1   :  { %17 = vsyncpa [#allocation6], 0 }
   0x2   :  { %18 = vsyncpa [#allocation9], 0 }
   0x3   :  { %19 = vsyncpa [#allocation12], 0  ;;  %s36_s19 = sshll.u32 %s2356_s1, 4  ;;  %s37_s19 = int_to_ptr.hbm [resolvable:$true] %s36_s19 }
   0x4   :  { %20 = vsyncpa [#allocation4], 0  ;;  %s2223_s20 = smov [#allocation5]   ;;  %s60_s24 = sshll.u32 %s2358_s3, 4  ;;  %s61_s24 = int_to_ptr.hbm [resolvable:$true] %s60_s24 }
   0x5   :  { %s38_s21 = sshll.u32 %s2223_s20, 4  ;;  %s2224_s25 = smov 64   ;;  %s39_s21 = int_to_ptr.vmem [resolvable:$true] %s38_s21 }
   0x6   :  { %s2225_s26 = smov 4   ;;  %s2226_s27 = smov [#allocation8]  }
   0x7   :  { %44 = dma.hbm_to_vmem [thread:$0]  %s37_s19, 7168, %s39_s21, [#allocation6], %s2224_s25, %s2224_s25, %s2225_s26  }
   0x8   :  { %s62_s28 = sshll.u32 %s2226_s27, 4  ;;  %s2227_s1 = smov 128   ;;  %s63_s28 = int_to_ptr.vmem [resolvable:$true] %s62_s28 }
   0x9   :  { %s2228_s29 = smov 8   ;;  %s90_s3 = sshll.u32 %s2362_s7, 4  ;;  %s91_s3 = int_to_ptr.hbm [resolvable:$true] %s90_s3 }
   0xa   :  { %68 = dma.hbm_to_vmem [thread:$0]  %s61_s24, 2048, %s63_s28, [#allocation9], %s2227_s1, %s2227_s1, %s2228_s29  }
   0xb   :  { %s2229_s13 = smov [#allocation11]   ;;  %s26_s17 = sshll.u32 %s2355_s0, 4  ;;  %s27_s17 = int_to_ptr.hbm [resolvable:$true] %s26_s17 }
   0xc   :  { %s92_s14 = sshll.u32 %s2229_s13, 4  ;;  %s2230_s18 = smov [#allocation2]   ;;  %s93_s14 = int_to_ptr.vmem [resolvable:$true] %s92_s14 }
   0xd   :  { %98 = dma.hbm_to_vmem [thread:$0]  %s91_s3, 2048, %s93_s14, [#allocation12], %s2224_s25, %s2224_s25, %s2225_s26  }
   0xe   :  { %s28_s19 = sshll.u32 %s2230_s18, 4  ;;  %s50_s22 = sshll.u32 %s2357_s2, 4  ;;  %s29_s19 = int_to_ptr.vmem [resolvable:$true] %s28_s19  ;;  %s51_s22 = int_to_ptr.hbm [resolvable:$true] %s50_s22 }
   0xf   :  { %31 = dma.hbm_to_vmem [thread:$0]  %s27_s17, 448, %s29_s19, [#allocation3]  }
  0x10   :  { %s75_s24 = sshll.u32 %s2360_s5, 4  ;;  %s2231_s27 = smov [#allocation7]   ;;  %s76_s24 = int_to_ptr.hbm [resolvable:$true] %s75_s24 }
  0x11   :  { %s52_s0 = sshll.u32 %s2231_s27, 4  ;;  %s2232_s28 = smov [#allocation10]   ;;  %s53_s0 = int_to_ptr.vmem [resolvable:$true] %s52_s0 }
  0x12   :  { %55 = dma.hbm_to_vmem [thread:$0]  %s51_s22, 16, %s53_s0, [#allocation6]  }
  0x13   :  { %s77_s30 = sshll.u32 %s2232_s28, 4  ;;  %s105_s13 = sshll.u32 %s2364_s9, 4  ;;  %s78_s30 = int_to_ptr.vmem [resolvable:$true] %s77_s30  ;;  %s106_s13 = int_to_ptr.hbm [resolvable:$true] %s105_s13 }
  0x14   :  { %83 = dma.hbm_to_vmem [thread:$0]  %s76_s24, 4096, %s78_s30, [#allocation9], %s2227_s1, %s2227_s1, %s2228_s29  }
  0x15   :  { %s2233_s2 = smov [#allocation13]  }
  0x16   :  { %s107_s14 = sshll.u32 %s2233_s2, 4  ;;  %s108_s14 = int_to_ptr.vmem [resolvable:$true] %s107_s14 }
  0x17   :  { %113 = dma.hbm_to_vmem [thread:$0]  %s106_s13, 1024, %s108_s14, [#allocation12], %s2224_s25, %s2224_s25, %s2225_s26  }
  0x18   :  { %2213 = dma.done.wait [#allocation3], 448  }
  0x19   :  { %2214 = vsyncadd [#allocation3], 4294966848 }
  0x1a   :  { %2215 = dma.done.wait [#allocation6], 7184  }
  0x1b   :  { %2216 = vsyncadd [#allocation6], 4294960112 }
  0x1c   :  { %2217 = dma.done.wait [#allocation9], 6144  }
  0x1d   :  { %2218 = vsyncadd [#allocation9], 4294961152 }
  0x1e   :  { %2219 = dma.done.wait [#allocation12], 3072  }
  0x1f   :  { %2220 = vsyncadd [#allocation12], 4294964224  ;;  %v1885_v0 = vld [vmem:[#allocation5 + $0x38] sm:$0xff]  ;;  %v1884_v3 = vld [vmem:[#allocation5 + $0x30] sm:$0xff]  ;;  %s2234_s15 = smov [#allocation14]   ;;  %s1353_s19 = sshll.u32 %s2366_s11, 4  ;;  %s1354_s19 = int_to_ptr.hbm [resolvable:$true] %s1353_s19 }
  0x20   :  { %v1893_v1 = vld [vmem:[#allocation5 + $0x78] sm:$0xff]  ;;  %625 = vmatpush.bf16.msra.mxu0 %v1885_v0  ;;  %v1892_v4 = vld [vmem:[#allocation5 + $0x70] sm:$0xff]  ;;  %v1883_v7 = vld [vmem:[#allocation5 + $0x28] sm:$0xff]  ;;  %s1351_s16 = sshll.u32 %s2234_s15, 4  ;;  %s1352_s16 = int_to_ptr.vmem [resolvable:$true] %s1351_s16 }
  0x21   :  { %v1901_v2 = vld [vmem:[#allocation5 + $0xb8] sm:$0xff]  ;;  %638 = vmatpush.bf16.msra.mxu1 %v1893_v1  ;;  %v1900_v5 = vld [vmem:[#allocation5 + $0xb0] sm:$0xff]  ;;  %v1891_v8 = vld [vmem:[#allocation5 + $0x68] sm:$0xff] }
  0x22   :  { %651 = vmatpush.bf16.msra.mxu2 %v1901_v2  ;;  %v1909_v6 = vld [vmem:[#allocation5 + $0xf8] sm:$0xff]  ;;  %v1899_v9 = vld [vmem:[#allocation5 + $0xa8] sm:$0xff]  ;;  %v1908_v10 = vld [vmem:[#allocation5 + $0xf0] sm:$0xff] }
  0x23   :  { %664 = vmatpush.bf16.msra.mxu3 %v1909_v6  ;;  %v1882_v11 = vld [vmem:[#allocation5 + $0x20] sm:$0xff]  ;;  %v1907_v14 = vld [vmem:[#allocation5 + $0xe8] sm:$0xff]  ;;  %v1881_v15 = vld [vmem:[#allocation5 + $0x18] sm:$0xff] }
  0x24   :  { %626 = vmatpush.bf16.msra.mxu0 %v1884_v3  ;;  %v1890_v12 = vld [vmem:[#allocation5 + $0x60] sm:$0xff]  ;;  %v1889_v16 = vld [vmem:[#allocation5 + $0x58] sm:$0xff]  ;;  %v1880_v19 = vld [vmem:[#allocation5 + $0x10] sm:$0xff] }
  0x25   :  { %639 = vmatpush.bf16.msra.mxu1 %v1892_v4  ;;  %v1898_v13 = vld [vmem:[#allocation5 + $0xa0] sm:$0xff]  ;;  %v1897_v17 = vld [vmem:[#allocation5 + $0x98] sm:$0xff]  ;;  %v1888_v20 = vld [vmem:[#allocation5 + $0x50] sm:$0xff] }
  0x26   :  { %652 = vmatpush.bf16.msra.mxu2 %v1900_v5  ;;  %v1906_v18 = vld [vmem:[#allocation5 + $0xe0] sm:$0xff]  ;;  %v1896_v21 = vld [vmem:[#allocation5 + $0x90] sm:$0xff]  ;;  %v1905_v22 = vld [vmem:[#allocation5 + $0xd8] sm:$0xff] }
  0x27   :  { %665 = vmatpush.bf16.msra.mxu3 %v1908_v10  ;;  %v1879_v23 = vld [vmem:[#allocation5 + $0x8] sm:$0xff]  ;;  %v1904_v27 = vld [vmem:[#allocation5 + $0xd0] sm:$0xff]  ;;  %v1878_v30 = vld [vmem:[#allocation5] sm:$0xff] }
  0x28   :  { %627 = vmatpush.bf16.msra.mxu0 %v1883_v7  ;;  %v1887_v24 = vld [vmem:[#allocation5 + $0x48] sm:$0xff]  ;;  %v1886_v31 = vld [vmem:[#allocation5 + $0x40] sm:$0xff]  ;;  %v1917_v35 = vld [vmem:[#allocation5 + $0x138] sm:$0xff] }
  0x29   :  { %640 = vmatpush.bf16.msra.mxu1 %v1891_v8  ;;  %v144_v25 = vld [vmem:[#allocation2] sm:$0xff]  ;;  %v145_v28 = vld [vmem:[#allocation2 + $0x8] sm:$0xff]  ;;  %v1925_v36 = vld [vmem:[#allocation5 + $0x178] sm:$0xff] }
  0x2a   :  { %653 = vmatpush.bf16.msra.mxu2 %v1899_v9  ;;  %v1895_v26 = vld [vmem:[#allocation5 + $0x88] sm:$0xff]  ;;  %v268_v29 = vunpack.c.l.b16 %v144_v25  ;;  %v270_v32 = vunpack.c.l.b16 %v145_v28  ;;  %v269_v33 = vunpack.c.h.b16 %v144_v25  ;;  %v1894_v34 = vld [vmem:[#allocation5 + $0x80] sm:$0xff]  ;;  %v1933_v37 = vld [vmem:[#allocation5 + $0x1b8] sm:$0xff]  ;;  %v271_v46 = vunpack.c.h.b16 %v145_v28 }
  0x2b   :  { %666 = vmatpush.bf16.msra.mxu3 %v1907_v14  ;;  %v1903_v39 = vld [vmem:[#allocation5 + $0xc8] sm:$0xff]  ;;  %v1916_v42 = vld [vmem:[#allocation5 + $0x130] sm:$0xff]  ;;  %v1902_v45 = vld [vmem:[#allocation5 + $0xc0] sm:$0xff] }
  0x2c   :  { %628 = vmatpush.bf16.msra.mxu0 %v1882_v11  ;;  %v275_v38 = vpack.c.b16 %v268_v29, %v268_v29  ;;  %v277_v40 = vpack.c.b16 %v270_v32, %v270_v32  ;;  %v276_v41 = vpack.c.b16 %v269_v33, %v269_v33  ;;  %v1924_v43 = vld [vmem:[#allocation5 + $0x170] sm:$0xff]  ;;  %v1915_v47 = vld [vmem:[#allocation5 + $0x128] sm:$0xff]  ;;  %v278_v50 = vpack.c.b16 %v271_v46, %v271_v46  ;;  %v1914_v51 = vld [vmem:[#allocation5 + $0x120] sm:$0xff] }
  0x2d   :  { %641 = vmatpush.bf16.msra.mxu1 %v1890_v12  ;;  %v1932_v44 = vld [vmem:[#allocation5 + $0x1b0] sm:$0xff]  ;;  %v1923_v48 = vld [vmem:[#allocation5 + $0x168] sm:$0xff]  ;;  %v1922_v52 = vld [vmem:[#allocation5 + $0x160] sm:$0xff] }
  0x2e   :  { %654 = vmatpush.bf16.msra.mxu2 %v1898_v13  ;;  %v1931_v49 = vld [vmem:[#allocation5 + $0x1a8] sm:$0xff]  ;;  %v1930_v53 = vld [vmem:[#allocation5 + $0x1a0] sm:$0xff]  ;;  %v1913_v54 = vld [vmem:[#allocation5 + $0x118] sm:$0xff] }
  0x2f   :  { %667 = vmatpush.bf16.msra.mxu3 %v1906_v18  ;;  %v1921_v55 = vld [vmem:[#allocation5 + $0x158] sm:$0xff]  ;;  %v1912_v57 = vld [vmem:[#allocation5 + $0x110] sm:$0xff]  ;;  %v1911_v60 = vld [vmem:[#allocation5 + $0x108] sm:$0xff] }
  0x30   :  { %629 = vmatpush.bf16.msra.mxu0 %v1881_v15  ;;  %v1929_v56 = vld [vmem:[#allocation5 + $0x198] sm:$0xff]  ;;  %v1920_v58 = vld [vmem:[#allocation5 + $0x150] sm:$0xff]  ;;  %v1919_v62 = vld [vmem:[#allocation5 + $0x148] sm:$0xff] }
  0x31   :  { %642 = vmatpush.bf16.msra.mxu1 %v1889_v16  ;;  %v1928_v59 = vld [vmem:[#allocation5 + $0x190] sm:$0xff]  ;;  %v1927_v63 = vld [vmem:[#allocation5 + $0x188] sm:$0xff]  ;;  %v147_v0 = vld [vmem:[#allocation2 + $0x18] sm:$0xf] }
  0x32   :  { %655 = vmatpush.bf16.msra.mxu2 %v1897_v17  ;;  %v146_v61 = vld [vmem:[#allocation2 + $0x10] sm:$0xff]  ;;  %v1910_v2 = vld [vmem:[#allocation5 + $0x100] sm:$0xff]  ;;  %v274_v4 = vunpack.c.l.b16 %v147_v0  ;;  %v1947_v16 = vld [vmem:[#allocation8 + $0x64] sm:$0xf0] }
  0x33   :  { %668 = vmatpush.bf16.msra.mxu3 %v1905_v22  ;;  %v272_v1 = vunpack.c.l.b16 %v146_v61  ;;  %v273_v3 = vunpack.c.h.b16 %v146_v61  ;;  %v1918_v5 = vld [vmem:[#allocation5 + $0x140] sm:$0xff]  ;;  %v1648_v10 = vld [vmem:[#allocation8 + $0x70] sm:$0xf]  ;;  %v1949_v11 = vld [vmem:[#allocation8 + $0x74] sm:$0xf0] }
  0x34   :  { %630 = vmatpush.bf16.msra.mxu0 %v1880_v19  ;;  %v1926_v6 = vld [vmem:[#allocation5 + $0x180] sm:$0xff]  ;;  %v281_v9 = vpack.c.b16 %v274_v4, %v274_v4  ;;  %v1948_v12 = vld [vmem:[#allocation8 + $0x74] sm:$0xf]  ;;  %v1649_v13 = vor.u32 %v1949_v11, %v1648_v10  ;;  %v1642_v19 = vld [vmem:[#allocation8 + $0x68] sm:$0xf0] }
  0x35   :  { %643 = vmatpush.bf16.msra.mxu1 %v1888_v20  ;;  %v279_v7 = vpack.c.b16 %v272_v1, %v272_v1  ;;  %v280_v8 = vpack.c.b16 %v273_v3, %v273_v3  ;;  %v1650_v14 = vld [vmem:[#allocation8 + $0x78] sm:$0xf0]  ;;  %v1640_v15 = vld [vmem:[#allocation8 + $0x60] sm:$0xf]  ;;  %v1946_v18 = vld [vmem:[#allocation8 + $0x64] sm:$0xf] }
  0x36   :  { %656 = vmatpush.bf16.msra.mxu2 %v1896_v21  ;;  %v1653_v17 = vor.u32 %v1948_v12, %v1650_v14  ;;  %v1641_v20 = vor.u32 %v1947_v16, %v1640_v15  ;;  %v1645_v21 = vor.u32 %v1946_v18, %v1642_v19  ;;  %v1632_v22 = vld [vmem:[#allocation8 + $0x50] sm:$0xf]  ;;  %v1943_v28 = vld [vmem:[#allocation8 + $0x44] sm:$0xf0]  ;;  %v1981_v1 = vld [vmem:[#allocation10 + $0xf4] sm:$0xf0] }
  0x37   :  { %669 = vmatpush.bf16.msra.mxu3 %v1904_v27  ;;  %v1624_v27 = vld [vmem:[#allocation8 + $0x40] sm:$0xf]  ;;  %v1776_v0 = vld [vmem:[#allocation10 + $0xf0] sm:$0xf]  ;;  %v1778_v4 = vld [vmem:[#allocation10 + $0xf8] sm:$0xf0] }
  0x38   :  { %631 = vmatpush.bf16.msra.mxu0 %v1879_v23  ;;  %v1945_v23 = vld [vmem:[#allocation8 + $0x54] sm:$0xf0]  ;;  %v1625_v32 = vor.u32 %v1943_v28, %v1624_v27  ;;  %v1777_v3 = vor.u32 %v1981_v1, %v1776_v0  ;;  %v1770_v10 = vld [vmem:[#allocation10 + $0xe8] sm:$0xf0]  ;;  %v1712_v11 = vld [vmem:[#allocation10 + $0x70] sm:$0xf] }
  0x39   :  { %644 = vmatpush.bf16.msra.mxu1 %v1887_v24  ;;  %v1944_v24 = vld [vmem:[#allocation8 + $0x54] sm:$0xf]  ;;  %v1633_v25 = vor.u32 %v1945_v23, %v1632_v22  ;;  %v1965_v14 = vld [vmem:[#allocation10 + $0x74] sm:$0xf0]  ;;  %v1714_v16 = vld [vmem:[#allocation10 + $0x78] sm:$0xf0] }
  0x3a   :  { %657 = vmatpush.bf16.msra.mxu2 %v1895_v26  ;;  %v1634_v26 = vld [vmem:[#allocation8 + $0x58] sm:$0xf0]  ;;  %v1964_v15 = vld [vmem:[#allocation10 + $0x74] sm:$0xf]  ;;  %v1713_v18 = vor.u32 %v1965_v14, %v1712_v11  ;;  %v1962_v28 = vld [vmem:[#allocation10 + $0x64] sm:$0xf] }
  0x3b   :  { %670 = vmatpush.bf16.msra.mxu3 %v1903_v39  ;;  %v1637_v29 = vor.u32 %v1944_v24, %v1634_v26  ;;  %v1717_v19 = vor.u32 %v1964_v15, %v1714_v16  ;;  %v1976_v22 = vld [vmem:[#allocation10 + $0xd4] sm:$0xf]  ;;  %v1762_v24 = vld [vmem:[#allocation10 + $0xd8] sm:$0xf0]  ;;  %v1963_v26 = vld [vmem:[#allocation10 + $0x64] sm:$0xf0] }
  0x3c   :  { %632 = vmatpush.bf16.msra.mxu0 %v1878_v30  ;;  %v1942_v30 = vld [vmem:[#allocation8 + $0x44] sm:$0xf]  ;;  %v1736_v1 = vld [vmem:[#allocation10 + $0xa0] sm:$0xf] }
  0x3d   :  { %645 = vmatpush.bf16.msra.mxu1 %v1886_v31  ;;  %v1626_v31 = vld [vmem:[#allocation8 + $0x48] sm:$0xf0] }
  0x3e   :  { %658 = vmatpush.bf16.msra.mxu2 %v1894_v34  ;;  %v1629_v33 = vor.u32 %v1942_v30, %v1626_v31  ;;  %v1616_v34 = vld [vmem:[#allocation8 + $0x30] sm:$0xf] }
  0x3f   :  { %633 = vmatmul.bf16.vlgmr.msra.gmra.mxu0 %v275_v38  ;;  %671 = vmatpush.bf16.msra.mxu3 %v1902_v45 }
  0x40   :  { %677 = vmatpush.bf16.msrb.mxu0 %v1917_v35  ;;  %646 = vmatmul.bf16.vlgmr.msra.gmra.mxu1 %v276_v41  ;;  %v1941_v35 = vld [vmem:[#allocation8 + $0x34] sm:$0xf0]  ;;  %v1939_v41 = vld [vmem:[#allocation8 + $0x24] sm:$0xf0] }
  0x41   :  { %690 = vmatpush.bf16.msrb.mxu1 %v1925_v36  ;;  %659 = vmatmul.bf16.vlgmr.msra.gmra.mxu2 %v277_v40  ;;  %v1940_v36 = vld [vmem:[#allocation8 + $0x34] sm:$0xf]  ;;  %v1617_v38 = vor.u32 %v1941_v35, %v1616_v34  ;;  %v1608_v40 = vld [vmem:[#allocation8 + $0x20] sm:$0xf]  ;;  %v1765_v34 = vor.u32 %v1976_v22, %v1762_v24  ;;  %v1696_v35 = vld [vmem:[#allocation10 + $0x50] sm:$0xf] }
  0x42   :  { %703 = vmatpush.bf16.msrb.mxu2 %v1933_v37  ;;  %672 = vmatmul.bf16.vlgmr.msra.gmra.mxu3 %v278_v50  ;;  %v1618_v37 = vld [vmem:[#allocation8 + $0x38] sm:$0xf0]  ;;  %v1936_v50 = vld [vmem:[#allocation8 + $0x14] sm:$0xf] }
  0x43   :  { %820 = vmatpush.bf16.msrb.mxu3 %v1649_v13  ;;  %v1621_v39 = vor.u32 %v1940_v36, %v1618_v37  ;;  %v1961_v36 = vld [vmem:[#allocation10 + $0x54] sm:$0xf0]  ;;  %v1960_v37 = vld [vmem:[#allocation10 + $0x54] sm:$0xf]  ;;  %v1730_v24 = vld [vmem:[#allocation10 + $0x98] sm:$0xf0] }
  0x44   :  { %678 = vmatpush.bf16.msrb.mxu0 %v1916_v42  ;;  %v1938_v42 = vld [vmem:[#allocation8 + $0x24] sm:$0xf]  ;;  %v1968_v22 = vld [vmem:[#allocation10 + $0x94] sm:$0xf] }
  0x45   :  { %691 = vmatpush.bf16.msrb.mxu1 %v1924_v43  ;;  %v1609_v43 = vor.u32 %v1939_v41, %v1608_v40  ;;  %v1754_v40 = vld [vmem:[#allocation10 + $0xc8] sm:$0xf0]  ;;  %v1698_v41 = vld [vmem:[#allocation10 + $0x58] sm:$0xf0] }
  0x46   :  { %704 = vmatpush.bf16.msrb.mxu2 %v1932_v44  ;;  %v1610_v44 = vld [vmem:[#allocation8 + $0x28] sm:$0xf0] }
  0x47   :  { %821 = vmatpush.bf16.msrb.mxu3 %v1641_v20  ;;  %v1613_v45 = vor.u32 %v1938_v42, %v1610_v44  ;;  %v1760_v20 = vld [vmem:[#allocation10 + $0xd0] sm:$0xf]  ;;  %v1701_v44 = vor.u32 %v1960_v37, %v1698_v41 }
  0x48   :  { %679 = vmatpush.bf16.msrb.mxu0 %v1915_v47 }
  0x49   :  { %692 = vmatpush.bf16.msrb.mxu1 %v1923_v48  ;;  %v1600_v48 = vld [vmem:[#allocation8 + $0x10] sm:$0xf] }
  0x4a   :  { %705 = vmatpush.bf16.msrb.mxu2 %v1931_v49  ;;  %v1937_v49 = vld [vmem:[#allocation8 + $0x14] sm:$0xf0] }
  0x4b   :  { %822 = vmatpush.bf16.msrb.mxu3 %v1633_v25  ;;  %v1704_v25 = vld [vmem:[#allocation10 + $0x60] sm:$0xf] }
  0x4c   :  { %680 = vmatpush.bf16.msrb.mxu0 %v1914_v51  ;;  %v1601_v51 = vor.u32 %v1937_v49, %v1600_v48  ;;  %v1705_v27 = vor.u32 %v1963_v26, %v1704_v25  ;;  %v1959_v48 = vld [vmem:[#allocation10 + $0x44] sm:$0xf0]  ;;  %v1958_v49 = vld [vmem:[#allocation10 + $0x44] sm:$0xf]  ;;  %v1733_v25 = vor.u32 %v1968_v22, %v1730_v24  ;;  %v1672_v26 = vld [vmem:[#allocation10 + $0x20] sm:$0xf] }
  0x4d   :  { %693 = vmatpush.bf16.msrb.mxu1 %v1922_v52  ;;  %v1602_v52 = vld [vmem:[#allocation8 + $0x18] sm:$0xf0] }
  0x4e   :  { %706 = vmatpush.bf16.msrb.mxu2 %v1930_v53  ;;  %v1605_v53 = vor.u32 %v1936_v50, %v1602_v52  ;;  %v1690_v50 = vld [vmem:[#allocation10 + $0x48] sm:$0xf0]  ;;  %v1744_v52 = vld [vmem:[#allocation10 + $0xb0] sm:$0xf] }
  0x4f   :  { %823 = vmatpush.bf16.msrb.mxu3 %v1625_v32  ;;  %v1752_v32 = vld [vmem:[#allocation10 + $0xc0] sm:$0xf] }
  0x50   :  { %681 = vmatpush.bf16.msrb.mxu0 %v1913_v54  ;;  %v1592_v54 = vld [vmem:[#allocation8] sm:$0xf] }
  0x51   :  { %694 = vmatpush.bf16.msrb.mxu1 %v1921_v55  ;;  %v1935_v55 = vld [vmem:[#allocation8 + $0x4] sm:$0xf0] }
  0x52   :  { %707 = vmatpush.bf16.msrb.mxu2 %v1929_v56  ;;  %v1934_v56 = vld [vmem:[#allocation8 + $0x4] sm:$0xf] }
  0x53   :  { %824 = vmatpush.bf16.msrb.mxu3 %v1617_v38 }
  0x54   :  { %682 = vmatpush.bf16.msrb.mxu0 %v1912_v57  ;;  %v1593_v57 = vor.u32 %v1935_v55, %v1592_v54  ;;  %v1972_v54 = vld [vmem:[#allocation10 + $0xb4] sm:$0xf]  ;;  %v1746_v55 = vld [vmem:[#allocation10 + $0xb8] sm:$0xf0] }
  0x55   :  { %695 = vmatpush.bf16.msrb.mxu1 %v1920_v58  ;;  %v1594_v58 = vld [vmem:[#allocation8 + $0x8] sm:$0xf0]  ;;  %v1749_v0 = vor.u32 %v1972_v54, %v1746_v55 }
  0x56   :  { %708 = vmatpush.bf16.msrb.mxu2 %v1928_v59  ;;  %v1987_v54 = vld [vmem:[#allocation11 + $0x28] sm:$0xff] }
  0x57   :  { %825 = vmatpush.bf16.msrb.mxu3 %v1609_v43  ;;  %v1697_v43 = vor.u32 %v1961_v36, %v1696_v35  ;;  %v1722_v36 = vld [vmem:[#allocation10 + $0x88] sm:$0xf0] }
  0x58   :  { %683 = vmatpush.bf16.msrb.mxu0 %v1911_v60  ;;  %v1597_v60 = vor.u32 %v1934_v56, %v1594_v58  ;;  %v1680_v58 = vld [vmem:[#allocation10 + $0x30] sm:$0xf]  ;;  %v1995_v55 = vld [vmem:[#allocation11 + $0x68] sm:$0xff] }
  0x59   :  { %696 = vmatpush.bf16.msrb.mxu1 %v1919_v62 }
  0x5a   :  { %709 = vmatpush.bf16.msrb.mxu2 %v1927_v63  ;;  %v2018_v63 = vld [vmem:[#allocation7] ss:$0 sm:$0xff] }
  0x5b   :  { %826 = vmatpush.bf16.msrb.mxu3 %v1601_v51 }
  0x5c   :  { %684 = vmatpush.bf16.msrb.mxu0 %v1910_v2  ;;  %v1980_v2 = vld [vmem:[#allocation10 + $0xf4] sm:$0xf] }
  0x5d   :  { %697 = vmatpush.bf16.msrb.mxu1 %v1918_v5  ;;  %v1768_v5 = vld [vmem:[#allocation10 + $0xe0] sm:$0xf] }
  0x5e   :  { %710 = vmatpush.bf16.msrb.mxu2 %v1926_v6  ;;  %v1979_v6 = vld [vmem:[#allocation10 + $0xe4] sm:$0xf0] }
  0x5f   :  { %685 = vmatmul.bf16.vlgmr.msrb.gmra.mxu0 %v279_v7  ;;  %827 = vmatpush.bf16.msrb.mxu3 %v1593_v57  ;;  %v1769_v13 = vor.u32 %v1979_v6, %v1768_v5  ;;  %v1693_v57 = vor.u32 %v1958_v49, %v1690_v50  ;;  %v1738_v5 = vld [vmem:[#allocation10 + $0xa8] sm:$0xf0] }
  0x60   :  { %698 = vmatmul.bf16.vlgmr.msrb.gmra.mxu1 %v280_v8  ;;  %833 = vmatpush.bf16.msra.mxu0 %v1653_v17  ;;  %v1781_v8 = vor.u32 %v1980_v2, %v1778_v4  ;;  %v1971_v2 = vld [vmem:[#allocation10 + $0xa4] sm:$0xf0]  ;;  %v1658_v49 = vld [vmem:[#allocation10 + $0x8] sm:$0xf0] }
  0x61   :  { %711 = vmatmul.bf16.vlgmr.msrb.gmra.mxu2 %v281_v9  ;;  %v1978_v9 = vld [vmem:[#allocation10 + $0xe4] sm:$0xf]  ;;  %1048 = vmatpush.bf16.msra.mxu1 %v1713_v18  ;;  %v1737_v11 = vor.u32 %v1971_v2, %v1736_v1 }
  0x62   :  { %1061 = vmatpush.bf16.msra.mxu2 %v1777_v3  ;;  %v1773_v17 = vor.u32 %v1978_v9, %v1770_v10 }
  0x63   :  { %1074 = vmatpush.bf16.msra.mxu3 %v1717_v19 }
  0x64   :  { %834 = vmatpush.bf16.msra.mxu0 %v1645_v21  ;;  %v1977_v21 = vld [vmem:[#allocation10 + $0xd4] sm:$0xf0] }
  0x65   :  { %v1761_v30 = vor.u32 %v1977_v21, %v1760_v20  ;;  %1049 = vmatpush.bf16.msra.mxu1 %v1705_v27  ;;  %v1728_v20 = vld [vmem:[#allocation10 + $0x90] sm:$0xf]  ;;  %v1969_v21 = vld [vmem:[#allocation10 + $0x94] sm:$0xf0]  ;;  %v1955_v27 = vld [vmem:[#allocation10 + $0x24] sm:$0xf0] }
  0x66   :  { %1062 = vmatpush.bf16.msra.mxu2 %v1769_v13 }
  0x68   :  { %835 = vmatpush.bf16.msra.mxu0 %v1637_v29  ;;  %v1706_v29 = vld [vmem:[#allocation10 + $0x68] sm:$0xf0] }
  0x69   :  { %v1709_v31 = vor.u32 %v1962_v28, %v1706_v29  ;;  %1050 = vmatpush.bf16.msra.mxu1 %v1697_v43  ;;  %v1954_v28 = vld [vmem:[#allocation10 + $0x24] sm:$0xf]  ;;  %v1673_v29 = vor.u32 %v1955_v27, %v1672_v26 }
  0x6a   :  { %1063 = vmatpush.bf16.msra.mxu2 %v1761_v30  ;;  %v1674_v30 = vld [vmem:[#allocation10 + $0x28] sm:$0xf0] }
  0x6b   :  { %1075 = vmatpush.bf16.msra.mxu3 %v1709_v31  ;;  %v1677_v31 = vor.u32 %v1954_v28, %v1674_v30 }
  0x6c   :  { %836 = vmatpush.bf16.msra.mxu0 %v1629_v33  ;;  %v1975_v33 = vld [vmem:[#allocation10 + $0xc4] sm:$0xf0] }
  0x6f   :  { %1076 = vmatpush.bf16.msra.mxu3 %v1701_v44  ;;  %v1656_v44 = vld [vmem:[#allocation10] sm:$0xf] }
  0x70   :  { %837 = vmatpush.bf16.msra.mxu0 %v1621_v39  ;;  %v1974_v39 = vld [vmem:[#allocation10 + $0xc4] sm:$0xf] }
  0x71   :  { %v1757_v51 = vor.u32 %v1974_v39, %v1754_v40  ;;  %v1953_v39 = vld [vmem:[#allocation10 + $0x14] sm:$0xf0]  ;;  %v1952_v40 = vld [vmem:[#allocation10 + $0x14] sm:$0xf] }
  0x73   :  { %1077 = vmatpush.bf16.msra.mxu3 %v1693_v57  ;;  %v734_v57 = vld [vmem:[%s2359_s4] sm:$0x3] }
  0x74   :  { %838 = vmatpush.bf16.msra.mxu0 %v1613_v45  ;;  %v1688_v45 = vld [vmem:[#allocation10 + $0x40] sm:$0xf] }
  0x75   :  { %v1689_v56 = vor.u32 %v1959_v48, %v1688_v45  ;;  %v1951_v45 = vld [vmem:[#allocation10 + $0x4] sm:$0xf0] }
  0x76   :  { %v1657_v48 = vor.u32 %v1951_v45, %v1656_v44 }
  0x77   :  { %1051 = vmatpush.bf16.msra.mxu1 %v1689_v56  ;;  %v1986_v56 = vld [vmem:[#allocation11 + $0x20] sm:$0xff] }
  0x78   :  { %839 = vmatpush.bf16.msra.mxu0 %v1605_v53  ;;  %v1973_v53 = vld [vmem:[#allocation10 + $0xb4] sm:$0xf0] }
  0x7c   :  { %840 = vmatpush.bf16.msra.mxu0 %v1597_v60  ;;  %v1745_v60 = vor.u32 %v1973_v53, %v1744_v52  ;;  %v1997_v52 = vld [vmem:[#allocation11 + $0x78] sm:$0xff]  ;;  %v1988_v53 = vld [vmem:[#allocation11 + $0x30] sm:$0xff] }
  0x80   :  { %1087 = vmatpush.bf16.msrb.mxu0 %v1781_v8 }
  0x84   :  { %1088 = vmatpush.bf16.msrb.mxu0 %v1773_v17 }
  0x88   :  { %1089 = vmatpush.bf16.msrb.mxu0 %v1765_v34  ;;  %v1966_v34 = vld [vmem:[#allocation10 + $0x84] sm:$0xf] }
  0x89   :  { %v1725_v37 = vor.u32 %v1966_v34, %v1722_v36 }
  0x8c   :  { %1090 = vmatpush.bf16.msrb.mxu0 %v1757_v51  ;;  %v1989_v51 = vld [vmem:[#allocation11 + $0x38] sm:$0xff] }
  0x90   :  { %1091 = vmatpush.bf16.msrb.mxu0 %v1749_v0 }
  0xbc   :  { %v634_v46 = vpop.f32.mrf.mxu0 }
  0xbd   :  { %v2331_v47 = vpop.f32.mrf.mxu1  ;;  %v635_v23 = vadd.f32 %v2018_v63, %v634_v46  ;;  %v1753_v46 = vor.u32 %v1975_v33, %v1752_v32  ;;  %v1682_v63 = vld [vmem:[#allocation10 + $0x38] sm:$0xf0]  ;;  %v1720_v32 = vld [vmem:[#allocation10 + $0x80] sm:$0xf]  ;;  %v1967_v33 = vld [vmem:[#allocation10 + $0x84] sm:$0xf0] }
  0xbe   :  { %v1721_v35 = vor.u32 %v1967_v33, %v1720_v32 }
  0xbf   :  { %v648_v38 = vadd.f32 %v2331_v47, %v635_v23  ;;  %1064 = vmatpush.bf16.msra.mxu2 %v1753_v46  ;;  %v1729_v23 = vor.u32 %v1969_v21, %v1728_v20  ;;  %v1950_v46 = vld [vmem:[#allocation10 + $0x4] sm:$0xf] }
  0xc0   :  { %v1661_v50 = vor.u32 %v1950_v46, %v1658_v49 }
  0xc3   :  { %1065 = vmatpush.bf16.msra.mxu2 %v1745_v60 }
  0xc4   :  { %v2333_v59 = vpop.f32.mrf.mxu2  ;;  %v636_v61 = vpop.f32.mrf.mxu0 }
  0xc5   :  { %v649_v62 = vpop.f32.mrf.mxu1  ;;  %v2335_v7 = vpop.f32.mrf.mxu3  ;;  %v661_v47 = vadd.f32 %v2333_v59, %v648_v38  ;;  %v1957_v61 = vld [vmem:[#allocation10 + $0x34] sm:$0xf0]  ;;  %v1970_v59 = vld [vmem:[#allocation10 + $0xa4] sm:$0xf]  ;;  %v1664_v38 = vld [vmem:[#allocation10 + $0x10] sm:$0xf] }
  0xc6   :  { %v1956_v62 = vld [vmem:[#allocation10 + $0x34] sm:$0xf]  ;;  %v1681_v8 = vor.u32 %v1957_v61, %v1680_v58  ;;  %v1665_v41 = vor.u32 %v1953_v39, %v1664_v38  ;;  %v737_v58 = vperm.slane %v734_v57, 1  ;;  %v2001_v38 = vld [vmem:[#allocation13 + $0x18] sm:$0xff] }
  0xc7   :  { %v674_v3 = vadd.f32 %v2335_v7, %v661_v47  ;;  %v1685_v9 = vor.u32 %v1956_v62, %v1682_v63  ;;  %1066 = vmatpush.bf16.msra.mxu2 %v1737_v11  ;;  %v1996_v47 = vld [vmem:[#allocation11 + $0x70] sm:$0xff]  ;;  %v736_v63 = vperm.slane %v734_v57, 0  ;;  %v1983_v11 = vld [vmem:[#allocation11 + $0x8] sm:$0xff] }
  0xc8   :  { %1052 = vmatpush.bf16.msra.mxu1 %v1681_v8  ;;  %v1994_v8 = vld [vmem:[#allocation11 + $0x60] sm:$0xff]  ;;  %v2000_v39 = vld [vmem:[#allocation13 + $0x10] sm:$0xff] }
  0xc9   :  { %1078 = vmatpush.bf16.msra.mxu3 %v1685_v9  ;;  %v1984_v9 = vld [vmem:[#allocation11 + $0x10] sm:$0xff] }
  0xcb   :  { %1067 = vmatpush.bf16.msra.mxu2 %v1729_v23 }
  0xcc   :  { %v662_v12 = vpop.f32.mrf.mxu2  ;;  %1053 = vmatpush.bf16.msra.mxu1 %v1673_v29 }
  0xcd   :  { %v675_v42 = vpop.f32.mrf.mxu3  ;;  %v1741_v12 = vor.u32 %v1970_v59, %v1738_v5  ;;  %1079 = vmatpush.bf16.msra.mxu3 %v1677_v31 }
  0xce   :  { %v1666_v42 = vld [vmem:[#allocation10 + $0x18] sm:$0xf0] }
  0xcf   :  { %1092 = vmatpush.bf16.msrb.mxu0 %v1741_v12  ;;  %1068 = vmatpush.bf16.msra.mxu2 %v1721_v35  ;;  %v1669_v43 = vor.u32 %v1952_v40, %v1666_v42  ;;  %v1992_v12 = vld [vmem:[#allocation11 + $0x50] sm:$0xff]  ;;  %v1999_v40 = vld [vmem:[#allocation13 + $0x8] sm:$0xff] }
  0xd0   :  { %1054 = vmatpush.bf16.msra.mxu1 %v1665_v41  ;;  %v1998_v41 = vld [vmem:[#allocation13] sm:$0xff] }
  0xd1   :  { %1080 = vmatpush.bf16.msra.mxu3 %v1669_v43  ;;  %v2019_v43 = vld [vmem:[%s2363_s8] ss:$0 sm:$0xff] }
  0xd3   :  { %1093 = vmatpush.bf16.msrb.mxu0 %v1733_v25  ;;  %1249 = vmatpush.bf16.msrb.mxu2 %v1997_v52  ;;  %v2020_v52 = vld [vmem:[%s2365_s10] ss:$0 sm:$0xff] }
  0xd4   :  { %1055 = vmatpush.bf16.msra.mxu1 %v1657_v48 }
  0xd5   :  { %1081 = vmatpush.bf16.msra.mxu3 %v1661_v50 }
  0xd7   :  { %1094 = vmatpush.bf16.msrb.mxu0 %v1725_v37  ;;  %1250 = vmatpush.bf16.msrb.mxu2 %v1996_v47  ;;  %v2002_v37 = vld [vmem:[#allocation13 + $0x20] sm:$0xff] }
  0xd8   :  { %1236 = vmatpush.bf16.msrb.mxu1 %v1989_v51 }
  0xdb   :  { %1251 = vmatpush.bf16.msrb.mxu2 %v1995_v55 }
  0xdc   :  { %v686_v4 = vpop.f32.mrf.mxu0  ;;  %1237 = vmatpush.bf16.msrb.mxu1 %v1988_v53 }
  0xdd   :  { %v699_v6 = vpop.f32.mrf.mxu1  ;;  %v687_v10 = vadd.f32 %v686_v4, %v674_v3 }
  0xdf   :  { %v700_v13 = vadd.f32 %v699_v6, %v687_v10  ;;  %v1985_v6 = vld [vmem:[#allocation11 + $0x18] sm:$0xff]  ;;  %1252 = vmatpush.bf16.msrb.mxu2 %v1994_v8 }
  0xe0   :  { %1238 = vmatpush.bf16.msrb.mxu1 %v1987_v54  ;;  %v1993_v10 = vld [vmem:[#allocation11 + $0x58] sm:$0xff] }
  0xe3   :  { %1253 = vmatpush.bf16.msrb.mxu2 %v1993_v10 }
  0xe4   :  { %v712_v14 = vpop.f32.mrf.mxu2  ;;  %v688_v15 = vpop.f32.mrf.mxu0  ;;  %1239 = vmatpush.bf16.msrb.mxu1 %v1986_v56 }
  0xe5   :  { %v713_v7 = vadd.f32 %v712_v14, %v700_v13  ;;  %v701_v16 = vpop.f32.mrf.mxu1  ;;  %v1982_v13 = vld [vmem:[#allocation11] sm:$0xff]  ;;  %v1991_v14 = vld [vmem:[#allocation11 + $0x48] sm:$0xff]  ;;  %v2005_v15 = vld [vmem:[#allocation13 + $0x38] sm:$0xff] }
  0xe6   :  { %v2004_v16 = vld [vmem:[#allocation13 + $0x30] sm:$0xff] }
  0xe7   :  { %v716_v17 = vmax.f32 %v713_v7, 0.0  ;;  %1254 = vmatpush.bf16.msrb.mxu2 %v1992_v12  ;;  %v1990_v7 = vld [vmem:[#allocation11 + $0x40] sm:$0xff] }
  0xe8   :  { %1240 = vmatpush.bf16.msrb.mxu1 %v1985_v6 }
  0xe9   :  { %v717_v18 = vpack.c.bf16 %v716_v17, %v716_v17  ;;  %v2003_v17 = vld [vmem:[#allocation13 + $0x28] sm:$0xff] }
  0xeb   :  { %828 = vmatmul.bf16.vlgmr.msrb.gmra.mxu3 %v717_v18  ;;  %841 = vmatmul.bf16.vlgmr.msra.gmra.mxu0 %v717_v18 }
  0xec   :  { %v714_v19 = vpop.f32.mrf.mxu2  ;;  %1241 = vmatpush.bf16.msrb.mxu1 %v1984_v9  ;;  %1255 = vmatpush.bf16.msrb.mxu2 %v1991_v14 }
  0xed   :  { %1332 = vmatpush.bf16.msrb.mxu3 %v2005_v15  ;;  %v882_v19 = vld [vmem:[%s2361_s6] sm:$0x3] }
  0xee   :  { %v884_v20 = vperm.slane %v882_v19, 0  ;;  %v885_v26 = vperm.slane %v882_v19, 1 }
  0xf0   :  { %1242 = vmatpush.bf16.msrb.mxu1 %v1983_v11  ;;  %1256 = vmatpush.bf16.msrb.mxu2 %v1990_v7 }
  0xf1   :  { %1333 = vmatpush.bf16.msrb.mxu3 %v2004_v16 }
  0xf4   :  { %1243 = vmatpush.bf16.msrb.mxu1 %v1982_v13 }
  0xf5   :  { %1334 = vmatpush.bf16.msrb.mxu3 %v2003_v17 }
  0xf9   :  { %1335 = vmatpush.bf16.msrb.mxu3 %v2002_v37 }
  0xfd   :  { %1336 = vmatpush.bf16.msrb.mxu3 %v2001_v38 }
 0x101   :  { %1337 = vmatpush.bf16.msrb.mxu3 %v2000_v39 }
 0x105   :  { %1338 = vmatpush.bf16.msrb.mxu3 %v1999_v40 }
 0x109   :  { %1339 = vmatpush.bf16.msrb.mxu3 %v1998_v41 }
 0x168   :  { %v842_v60 = vpop.f32.mrf.mxu0 }
 0x169   :  { %v843_v61 = vadd.f32 %v842_v60, %v737_v58 }
 0x16b   :  { %v847_v62 = vmax.f32 %v843_v61, 0.0 }
 0x16d   :  { %v849_v0 = vpack.c.bf16 %v847_v62, %v847_v62 }
 0x16e   :  { %v829_v1 = vpop.f32.mrf.mxu3 }
 0x16f   :  { %v830_v2 = vadd.f32 %v829_v1, %v736_v63  ;;  %1069 = vmatmul.bf16.vlgmr.msra.gmra.mxu2 %v849_v0  ;;  %1095 = vmatmul.bf16.vlgmr.msrb.gmra.mxu0 %v849_v0 }
 0x170   :  { %v844_v3 = vpop.f32.mrf.mxu0 }
 0x171   :  { %v846_v4 = vmax.f32 %v830_v2, 0.0 }
 0x173   :  { %v848_v59 = vpack.c.bf16 %v846_v4, %v846_v4 }
 0x175   :  { %1056 = vmatmul.bf16.vlgmr.msra.gmra.mxu1 %v848_v59  ;;  %1082 = vmatmul.bf16.vlgmr.msra.gmra.mxu3 %v848_v59 }
 0x176   :  { %v831_v5 = vpop.f32.mrf.mxu3 }
 0x1ec   :  { %v1096_v18 = vpop.f32.mrf.mxu0 }
 0x1f2   :  { %v1057_v21 = vpop.f32.mrf.mxu1  ;;  %v1070_v22 = vpop.f32.mrf.mxu2 }
 0x1f3   :  { %v1058_v23 = vadd.f32 %v1057_v21, %v884_v20 }
 0x1f4   :  { %v1098_v24 = vpop.f32.mrf.mxu0 }
 0x1f5   :  { %v1071_v25 = vadd.f32 %v1070_v22, %v1058_v23 }
 0x1f7   :  { %v1100_v27 = vmax.f32 %v1071_v25, 0.0 }
 0x1f8   :  { %v1083_v28 = vpop.f32.mrf.mxu3 }
 0x1f9   :  { %v1102_v29 = vpack.c.bf16 %v1100_v27, %v1100_v27  ;;  %v1084_v30 = vadd.f32 %v1083_v28, %v885_v26 }
 0x1fa   :  { %v1059_v31 = vpop.f32.mrf.mxu1  ;;  %v1072_v32 = vpop.f32.mrf.mxu2 }
 0x1fb   :  { %v1097_v33 = vadd.f32 %v1096_v18, %v1084_v30  ;;  %1244 = vmatmul.bf16.vlgmr.msrb.gmra.mxu1 %v1102_v29 }
 0x1fd   :  { %v1101_v34 = vmax.f32 %v1097_v33, 0.0 }
 0x1ff   :  { %v1103_v35 = vpack.c.bf16 %v1101_v34, %v1101_v34 }
 0x200   :  { %v1085_v36 = vpop.f32.mrf.mxu3 }
 0x201   :  { %1257 = vmatmul.bf16.vlgmr.msrb.gmra.mxu2 %v1103_v35 }
 0x278   :  { %v1245_v42 = vpop.f32.mrf.mxu1 }
 0x279   :  { %v1246_v45 = vadd.f32 %v2019_v43, %v1245_v42 }
 0x280   :  { %v1247_v44 = vpop.f32.mrf.mxu1 }
 0x284   :  { %v1258_v46 = vpop.f32.mrf.mxu2 }
 0x285   :  { %v1259_v48 = vadd.f32 %v1258_v46, %v1246_v45 }
 0x287   :  { %v1262_v49 = vmax.f32 %v1259_v48, 0.0 }
 0x289   :  { %v1263_v50 = vpack.c.bf16 %v1262_v49, %v1262_v49 }
 0x28b   :  { %1340 = vmatmul.bf16.vlgmr.msrb.gmra.mxu3 %v1263_v50 }
 0x28c   :  { %v1260_v51 = vpop.f32.mrf.mxu2 }
 0x30e   :  { %v1341_v53 = vpop.f32.mrf.mxu3 }
 0x30f   :  { %v1342_v47 = vadd.f32 %v2020_v52, %v1341_v53 }
 0x311   :  { %1345 = vst [vmem:[#allocation14] sm:$0xff] %v1342_v47 }
 0x312   :  { %1356 = dma.vmem_to_hbm [thread:$0]  %s1352_s16, 128, %s1354_s19, [#allocation4]  }
 0x316   :  { %v1343_v54 = vpop.f32.mrf.mxu3 }
 0x317   :  { %2221 = dma.done.wait [#allocation4], 128  }
 0x318   :  { %2222 = vsyncadd [#allocation4], 4294967168 }
 0x319   :  { %1361 = vsyncpa [#allocation3], 1 }
 0x31a   :  { %1362 = vsyncpa [#allocation6], 1 }
 0x31b   :  { %1363 = vsyncpa [#allocation9], 1 }
 0x31c   :  { %1364 = vsyncpa [#allocation12], 1 }
 0x31d   :  { %1365 = vsyncpa [#allocation4], 1 }

</bundles_post_ra>
